<compile_context>
chip_gen: v6e
topology: v6e:2x2x1
jax: 0.10.0
libtpu: 0.0.40
codegen_flags: <defaults>
</compile_context>

<pallas_src>
import functools

import jax
import jax.numpy as jnp
from jax.experimental import pallas as pl
from jax.experimental.pallas import tpu as pltpu


# Lane widths tried in order of preference (all multiples of 128).
_LANE_CANDIDATES = (2048, 1920, 1792, 1536, 1280, 1152, 1024, 896, 768, 640,
                    512, 384, 256, 128)
# ~4 MiB of input per block; in+out double-buffered at f32 is ~16 MiB of VMEM.
_TARGET_BLOCK_BYTES = 4 * 1024 * 1024
# Explicit scoped-VMEM limit: above v5e's 16 MiB default, well inside physical
# VMEM on every generation (v7x: 64 MiB).
_VMEM_LIMIT_BYTES = 32 * 1024 * 1024


def _static_kernel(x_ref, o_ref, *, positive):
    # Static slope: single compare + select in the input's native dtype.
    x = x_ref[...]
    cond = (x > 0) if positive else (x < 0)
    one = jnp.asarray(1, dtype=o_ref.dtype)
    zero = jnp.asarray(0, dtype=o_ref.dtype)
    o_ref[...] = jnp.where(cond, one, zero)


def _dynamic_kernel(slope_ref, x_ref, o_ref):
    # Traced slope: f32 scalar in SMEM, multiply + compare in f32.
    z = slope_ref[0] * x_ref[...].astype(jnp.float32)
    one = jnp.asarray(1, dtype=o_ref.dtype)
    zero = jnp.asarray(0, dtype=o_ref.dtype)
    o_ref[...] = jnp.where(z > 0.0, one, zero)


def _xla_binarize(x, slope, out_dtype):
    # Tiny tail (< 128 elements) / sub-128 fallback; same compare semantics.
    if isinstance(slope, (int, float)):
        if slope == 0:
            return jnp.zeros(x.shape, out_dtype)
        cond = (x > 0) if slope > 0 else (x < 0)
    else:
        cond = jnp.asarray(slope, jnp.float32) * x.astype(jnp.float32) > 0.0
    return jnp.where(cond, jnp.asarray(1, out_dtype), jnp.asarray(0, out_dtype))


def _pick_lane(main):
    """Largest lane width (multiple of 128) dividing `main` with rows >= 8."""
    for cand in _LANE_CANDIDATES:
        if main % cand == 0 and main // cand >= 8:
            return cand
    return 128  # always divides `main` (main is a multiple of 128)


def _block_rows_and_grid(rows, lane, in_itemsize, out_itemsize):
    """Block rows (sublane-packed multiple) and 1-D grid size."""
    pack = 8 * max(1, 4 // min(in_itemsize, out_itemsize))  # 8 f32/16 bf16/32 i8
    if rows <= pack:
        return rows, 1  # single full-extent block (exempt from the 8-rule)
    target = max(pack,
                 (_TARGET_BLOCK_BYTES // (lane * in_itemsize)) // pack * pack)
    block_rows = min(target, (rows // pack) * pack)
    # Keep >= 4 blocks above ~1 MiB (2 per v7x TensorCore), >= 2 otherwise, so
    # BlockSpec auto double-buffering overlaps DMA with compute.
    total_bytes = rows * lane * in_itemsize
    min_blocks = 4 if total_bytes > (1 << 20) else 2
    cap = (rows // (min_blocks * pack)) * pack
    if cap >= pack:
        block_rows = min(block_rows, cap)
    return block_rows, pl.cdiv(rows, block_rows)


def deterministic_binary_activation(x, slope=1.0, out_dtype=None):
    """x: float array (any shape, e.g. NCHW); slope: Python or JAX scalar.

    Returns 0/1 values in `out_dtype` (default: x.dtype).
    """
    orig_shape = x.shape
    out_dtype = jnp.dtype(out_dtype) if out_dtype is not None else x.dtype
    total = x.size
    if total == 0:
        return jnp.zeros(orig_shape, out_dtype)

    static_slope = isinstance(slope, (int, float))
    if static_slope and slope == 0:
        # hardsigmoid(0) == 0.5 rounds (half-to-even) to 0 everywhere.
        return jnp.zeros(orig_shape, out_dtype)

    flat = x.reshape(-1)

    # Split into a 128-divisible main slab (Pallas) and a <128-element tail.
    main = (total // 128) * 128
    tail = total - main
    if main == 0:  # fewer than 128 elements: not worth a kernel launch
        return _xla_binarize(flat, slope, out_dtype).reshape(orig_shape)

    lane = _pick_lane(main)
    rows = main // lane
    x2d = (flat if tail == 0 else flat[:main]).reshape(rows, lane)

    in_itemsize = jnp.dtype(x.dtype).itemsize
    out_itemsize = out_dtype.itemsize
    block_rows, num_blocks = _block_rows_and_grid(rows, lane,
                                                  in_itemsize, out_itemsize)

    x_spec = pl.BlockSpec((block_rows, lane), lambda i: (i, 0))
    o_spec = pl.BlockSpec((block_rows, lane), lambda i: (i, 0))
    compiler_params = pltpu.CompilerParams(
        dimension_semantics=("parallel",),          # shard across TCs (v7x)
        vmem_limit_bytes=_VMEM_LIMIT_BYTES,
    )

    if static_slope:
        kernel = functools.partial(_static_kernel, positive=(slope > 0))
        in_specs = [x_spec]
        operands = (x2d,)
    else:
        kernel = _dynamic_kernel
        in_specs = [pl.BlockSpec(memory_space=pltpu.SMEM), x_spec]
        operands = (jnp.asarray(slope, dtype=jnp.float32).reshape(1), x2d)

    main_out = pl.pallas_call(
        kernel,
        out_shape=jax.ShapeDtypeStruct((rows, lane), out_dtype),
        grid=(num_blocks,),
        in_specs=in_specs,
        out_specs=o_spec,
        compiler_params=compiler_params,
    )(*operands)

    out_flat = main_out.reshape(-1)
    if tail:
        # Rare path (total % 128 != 0): tiny XLA tail + concat.
        tail_out = _xla_binarize(flat[main:], slope, out_dtype)
        out_flat = jnp.concatenate([out_flat, tail_out])
    return out_flat.reshape(orig_shape)


def _reference(x, slope=1.0):
    xf = x.astype(jnp.float32)
    s = jnp.asarray(slope, jnp.float32)
    hs = jnp.clip((s * xf + 1.0) * 0.5, 0.0, 1.0)
    return jnp.round(hs)


if __name__ == "__main__":
    key = jax.random.PRNGKey(0)

    # 1) Main NCHW case, static positive slope (128-divisible -> pure Pallas).
    x = jax.random.normal(key, (2, 4, 16, 16), dtype=jnp.float32)
    out = jax.block_until_ready(deterministic_binary_activation(x, 2.0))
    assert out.shape == x.shape and out.dtype == x.dtype
    assert jnp.allclose(out, _reference(x, 2.0))
    assert bool(jnp.all((out == 0.0) | (out == 1.0)))

    # 2) Non-128-divisible total (2*3*14*14 = 1176): Pallas main + XLA tail.
    x2 = jax.random.normal(jax.random.PRNGKey(1), (2, 3, 14, 14),
                           dtype=jnp.float32)
    out2 = jax.block_until_ready(deterministic_binary_activation(x2, 0.5))
    assert jnp.allclose(out2, _reference(x2, 0.5))

    # 3) Negative static slope.
    out3 = jax.block_until_ready(deterministic_binary_activation(x, -1.0))
    assert jnp.allclose(out3, _reference(x, -1.0))

    # 4) bf16 input, native-dtype compare path.
    xb = x.astype(jnp.bfloat16)
    out4 = jax.block_until_ready(deterministic_binary_activation(xb, 1.0))
    assert out4.dtype == jnp.bfloat16
    assert jnp.allclose(out4.astype(jnp.float32), _reference(xb, 1.0))

    # 5) Traced (JAX scalar) slope -> SMEM path.
    out5 = jax.block_until_ready(
        deterministic_binary_activation(x, jnp.float32(1.5)))
    assert jnp.allclose(out5, _reference(x, 1.5))

    # 6) Larger tensor exercising the multi-block grid / pipelining path.
    x6 = jax.random.normal(jax.random.PRNGKey(2), (4, 8, 32, 32),
                           dtype=jnp.float32)
    out6 = jax.block_until_ready(deterministic_binary_activation(x6, 3.0))
    assert jnp.allclose(out6, _reference(x6, 3.0))

    print("KERNEL_OK")
</pallas_src>

<mosaic_0001>
module attributes {stable_mosaic.version = 11 : i64} {
  func.func @_static_kernel(%arg0: i32, %arg1: memref<8x256xf32, #tpu.memory_space<vmem>>, %arg2: memref<8x256xf32, #tpu.memory_space<vmem>>) attributes {dimension_semantics = [#tpu.dimension_semantics<parallel>], iteration_bounds = array<i64: 1>, scalar_prefetch = 0 : i64, scratch_operands = 0 : i64, tpu.core_type = #tpu.core_type<tc>, window_params = [{transform_indices = @transform_0, window_bounds = array<i64: 8, 256>}, {transform_indices = @transform_1, window_bounds = array<i64: 8, 256>}]} {
    %c0 = arith.constant 0 : index
    %c0_0 = arith.constant 0 : index
    %0 = vector.load %arg1[%c0, %c0_0] : memref<8x256xf32, #tpu.memory_space<vmem>>, vector<8x256xf32>
    %cst = arith.constant 0.000000e+00 : f32
    %1 = vector.broadcast %cst : f32 to vector<8x256xf32>
    %2 = arith.cmpf ogt, %0, %1 : vector<8x256xf32>
    %cst_1 = arith.constant 1.000000e+00 : f32
    %cst_2 = arith.constant 0.000000e+00 : f32
    %3 = vector.broadcast %cst_1 : f32 to vector<8x256xf32>
    %4 = vector.broadcast %cst_2 : f32 to vector<8x256xf32>
    %5 = arith.select %2, %3, %4 : vector<8x256xi1>, vector<8x256xf32>
    %c0_3 = arith.constant 0 : index
    %c0_4 = arith.constant 0 : index
    %6 = vector.load %arg2[%c0_3, %c0_4] : memref<8x256xf32, #tpu.memory_space<vmem>>, vector<8x256xf32>
    tpu.vector_store %arg2[%c0_3, %c0_4], %5 {strides = array<i32>} : memref<8x256xf32, #tpu.memory_space<vmem>>, vector<8x256xf32>,
    return
  }
  func.func @transform_0(%arg0: i32) -> (i32, i32) {
    %c0_i32 = arith.constant 0 : i32
    %c0_i32_0 = arith.constant 0 : i32
    return %arg0, %c0_i32 : i32, i32
  }
  func.func @transform_1(%arg0: i32) -> (i32, i32) {
    %c0_i32 = arith.constant 0 : i32
    %c0_i32_0 = arith.constant 0 : i32
    return %arg0, %c0_i32 : i32, i32
  }
}

</mosaic_0001>

<bundles_post_ra>
// kernel: tpu_custom_call.1
= control target key start
LH: loop header
LB: loop body
LE: loop exit
PB: predicated region body
PF: predicated region fallthrough
CT: control target
= control target key end

     0   :  { %6 = vsyncpa [#allocation3], 0  ;;  %s110_s0 = inlined_call_operand.hbm [shape: f32[8,256], index: 0, kind: input, shape index: {}]   ;;  %s111_s1 = inlined_call_operand.hbm [shape: f32[8,256], index: 1, kind: output, shape index: {}]  }
   0x1   :  { %7 = vsyncpa [#allocation4], 0  ;;  %s91_s6 = smov [#allocation2]  }
   0x2   :  { %s14_s7 = sshll.u32 %s91_s6, 4  ;;  %s15_s7 = int_to_ptr.vmem [resolvable:$true] %s14_s7 }
   0x3   :  { %s55_s8 = scalar_lea.vmem %s15_s7, 256  ;;  %p60_p1 = scmp.lt.s32.totalorder %s15_s7, %s15_s7 }
   0x4   :  { %p56_p0 = scmp.ne.s32.totalorder %s15_s7, %s55_s8  ;;  %p61_p2 = scmp.lt.s32.totalorder %s55_s8, %s55_s8 }
   0x6   :  { %p62_p3 = por %p61_p2, %p60_p1 }
   0x8   :  { %p63_p4 = pnand %p62_p3, %p56_p0 }
   0xa   :  { %66 = shalt.err (!%p63_p4)
}
   0xb   :  { %17 = dma.hbm_to_vmem [thread:$0]  %s110_s0, 256, %s15_s7, [#allocation3]  }
   0xc   :  { %87 = dma.done.wait [#allocation3], 256  }
   0xd   :  { %88 = vsyncadd [#allocation3], 4294967040  ;;  %s92_s11 = smov [#allocation5]   ;;  %v21_v0 = vld [vmem:[#allocation2] sm:$0xff]  ;;  %v22_v1 = vld [vmem:[#allocation2 + $0x8] sm:$0xff]  ;;  %v93_v2 = vmov 0.0  }
   0xe   :  { %s35_s12 = sshll.u32 %s92_s11, 4  ;;  %vm23_vm0 = vcmp.gt.f32.partialorder %v21_v0, 0.0  ;;  %vm24_vm1 = vcmp.gt.f32.partialorder %v22_v1, 0.0  ;;  %s36_s12 = int_to_ptr.vmem [resolvable:$true] %s35_s12 }
   0xf   :  { %v25_v3 = vsel %vm23_vm0, 1.0, %v93_v2  ;;  %v26_v4 = vsel %vm24_vm1, 1.0, %v93_v2  ;;  %s67_s13 = scalar_lea.vmem %s36_s12, 256  ;;  %p72_p6 = scmp.lt.s32.totalorder %s36_s12, %s36_s12 }
  0x10   :  { %27 = vst [vmem:[#allocation5] sm:$0xff] %v25_v3  ;;  %28 = vst [vmem:[#allocation5 + $0x8] sm:$0xff] %v26_v4  ;;  %p68_p5 = scmp.ne.s32.totalorder %s36_s12, %s67_s13  ;;  %p73_p7 = scmp.lt.s32.totalorder %s67_s13, %s67_s13 }
  0x12   :  { %p74_p8 = por %p73_p7, %p72_p6 }
  0x14   :  { %p75_p9 = pnand %p74_p8, %p68_p5 }
  0x16   :  { %78 = shalt.err (!%p75_p9)
}
  0x17   :  { %38 = dma.vmem_to_hbm [thread:$0]  %s36_s12, 256, %s111_s1, [#allocation4]  }
  0x18   :  { %89 = dma.done.wait [#allocation4], 256  }
  0x19   :  { %90 = vsyncadd [#allocation4], 4294967040 }
  0x1a   :  { %42 = vsyncpa [#allocation3], 1 }
  0x1b   :  { %43 = vsyncpa [#allocation4], 1 }

</bundles_post_ra>
